<compile_context>
chip_gen: v5e
topology: v5e:2x2
jax: 0.10.0
libtpu: 0.0.40
codegen_flags: <defaults>
</compile_context>

<pallas_src>
import functools

import jax
import jax.numpy as jnp
from jax import lax
from jax.experimental import pallas as pl
from jax.experimental.pallas import tpu as pltpu


def _cdiv(a, b):
    return -(-a // b)


def _round_up(x, m):
    return ((x + m - 1) // m) * m


def _dice_sums_kernel(pred_ref, tgt_ref, inter_ref, sums_ref,
                      inter_acc, sums_acc, *,
                      num_classes, ignore_index, valid_len, tile_rows,
                      tiles_per_split, padded):
    """Accumulate per-(batch, split, class) dice partial sums for one spatial tile.

    pred_ref : (1, C, TS, 128)  logits, native dtype (f32 / bf16)
    tgt_ref  : (1, 1, TS, 128)  labels, native int dtype (i8 / i16 / i32)
    inter_ref: (1, 1, C, 128)   f32 lane-partial intersection (written once per (b,s))
    sums_ref : (1, 1, C, 128)   f32 lane-partial sum-of-sets  (written once per (b,s))
    inter_acc: (C, 8, 128)      f32 VMEM scratch accumulator
    sums_acc : (C, 8, 128)      f32 VMEM scratch accumulator
    """
    C = num_classes
    TS = tile_rows
    t = pl.program_id(2)

    @pl.when(t == 0)
    def _init():
        inter_acc[...] = jnp.zeros_like(inter_acc)
        sums_acc[...] = jnp.zeros_like(sums_acc)

    tgt = tgt_ref[0, 0].astype(jnp.int32)                 # (TS, 128), widened in-kernel
    ignored = tgt == ignore_index
    maskf = 1.0 - ignored.astype(jnp.float32)             # 0 at ignored pixels
    tgt_m = jnp.where(ignored, 0, tgt)                    # ignored -> class 0 (PyTorch semantics)

    if padded:
        # Spatial padding (to lane/sublane-align the image) must contribute nothing,
        # unlike ignore_index pixels which contribute uniform 1/C probabilities.
        s = pl.program_id(1)
        row0 = (s * tiles_per_split + t) * TS
        rows_i = lax.broadcasted_iota(jnp.int32, (TS, 128), 0)
        lanes_i = lax.broadcasted_iota(jnp.int32, (TS, 128), 1)
        validf = ((row0 + rows_i) * 128 + lanes_i < valid_len).astype(jnp.float32)
    else:
        validf = None

    if C == 2:
        # softmax([x0, x1]) over classes == [1 - sigmoid(x1-x0), sigmoid(x1-x0)].
        # Stable sigmoid; reciprocal on the EUP + one Newton step (~1e-8 rel err).
        x0 = pred_ref[0, 0].astype(jnp.float32)
        x1 = pred_ref[0, 1].astype(jnp.float32)
        d = (x1 - x0) * maskf                              # masked logits -> 0 -> probs 1/2
        e = jnp.exp(-jnp.abs(d))
        den = 1.0 + e
        inv = pl.reciprocal(den, approx=True)
        inv = inv * (2.0 - den * inv)
        p1 = jnp.where(d >= 0, inv, e * inv)
        probs = [1.0 - p1, p1]
    else:
        # Per-class full-vreg planes: softmax over C is pure elementwise VPU/EUP math.
        logits = [pred_ref[0, c].astype(jnp.float32) * maskf for c in range(C)]
        mx = logits[0]
        for c in range(1, C):
            mx = jnp.maximum(mx, logits[c])
        exps = [jnp.exp(x - mx) for x in logits]
        den = exps[0]
        for c in range(1, C):
            den = den + exps[c]
        inv = pl.reciprocal(den, approx=True)
        inv = inv * (2.0 - den * inv)                      # Newton step restores accuracy
        probs = [e * inv for e in exps]

    # Fold each (TS, 128) tile contribution to a single (8, 128) vreg with pure VPU
    # adds and accumulate into scratch; XLU reductions are deferred to the flush.
    for c in range(C):
        oh = (tgt_m == c).astype(jnp.float32)
        pc = probs[c]
        if padded:
            oh = oh * validf
            pc = pc * validf
        inter_acc[c] += (pc * oh).reshape(TS // 8, 8, 128).sum(axis=0)
        sums_acc[c] += (pc + oh).reshape(TS // 8, 8, 128).sum(axis=0)

    @pl.when(t == pl.num_programs(2) - 1)
    def _flush():
        # Once per (batch, split): cross-sublane reduce and lane-dense store.
        inter_ref[...] = jnp.sum(inter_acc[...], axis=1).reshape(1, 1, C, 128)
        sums_ref[...] = jnp.sum(sums_acc[...], axis=1).reshape(1, 1, C, 128)


def dice_loss_pallas(pred, target, num_classes, weight=None, ignore_index=-100,
                     block_cap_bytes=2 * 1024 * 1024):
    """pred: (N, C, H, W) float (f32/bf16), target: (N, H, W) int (i8/i16/i32).

    Returns the scalar dice loss, matching the PyTorch softmax branch.
    """
    N, C, H, W = pred.shape
    # TODO(synk): num_classes == 1 sigmoid branch not implemented.
    assert C == num_classes and num_classes >= 2
    assert target.shape == (N, H, W)
    L = H * W

    pred_isz = jnp.dtype(pred.dtype).itemsize
    tgt_isz = jnp.dtype(target.dtype).itemsize

    # --- spatial tiling ------------------------------------------------------
    rows = _cdiv(L, 128)                      # 128-lane rows needed for the image
    # v7x megacore: if the batch alone can't balance the 2 cores, split space 2-way.
    n_split = 2 if (N % 2 == 1 and rows >= 64) else 1
    rows_per_split = _cdiv(rows, n_split)
    # Cap each per-step input block (pred + target, single buffer) at ~2 MiB; the
    # layout has no sublane padding so logical bytes == VMEM bytes here.
    per_row_bytes = 128 * (C * pred_isz + tgt_isz)
    ts_cap = max(32, (block_cap_bytes // per_row_bytes) // 32 * 32)
    n_tiles = max(1, _cdiv(rows_per_split, ts_cap))
    # Spread rows evenly over tiles to minimize padding; 32-row alignment keeps the
    # second-minor block dim legal for f32 / bf16 / i16 / i8 inputs alike.
    tile_rows = _round_up(_cdiv(rows_per_split, n_tiles), 32)
    rows_pad = n_split * n_tiles * tile_rows
    l_pad = rows_pad * 128
    padded = l_pad != L

    # --- layout: (N, C, H, W) -> (N, C, rows_pad, 128).  Pure reshape (+ pad only
    # when needed); NO dtype upcast — narrow dtypes stream at native width and are
    # widened in-kernel after the DMA.
    pred_l = pred.reshape(N, C, L)
    tgt_l = target.reshape(N, 1, L)
    if padded:
        pred_l = jnp.pad(pred_l, ((0, 0), (0, 0), (0, l_pad - L)))
        tgt_l = jnp.pad(tgt_l, ((0, 0), (0, 0), (0, l_pad - L)))
    pred_r = pred_l.reshape(N, C, rows_pad, 128)
    tgt_r = tgt_l.reshape(N, 1, rows_pad, 128)

    kernel = functools.partial(
        _dice_sums_kernel,
        num_classes=C, ignore_index=ignore_index, valid_len=L,
        tile_rows=tile_rows, tiles_per_split=n_tiles, padded=padded)

    inter4, sums4 = pl.pallas_call(
        kernel,
        out_shape=(jax.ShapeDtypeStruct((N, n_split, C, 128), jnp.float32),
                   jax.ShapeDtypeStruct((N, n_split, C, 128), jnp.float32)),
        grid_spec=pltpu.PrefetchScalarGridSpec(
            num_scalar_prefetch=0,
            grid=(N, n_split, n_tiles),
            in_specs=[
                pl.BlockSpec((1, C, tile_rows, 128),
                             lambda b, s, t: (b, 0, s * n_tiles + t, 0)),
                pl.BlockSpec((1, 1, tile_rows, 128),
                             lambda b, s, t: (b, 0, s * n_tiles + t, 0)),
            ],
            out_specs=[
                pl.BlockSpec((1, 1, C, 128), lambda b, s, t: (b, s, 0, 0)),
                pl.BlockSpec((1, 1, C, 128), lambda b, s, t: (b, s, 0, 0)),
            ],
            scratch_shapes=[
                pltpu.VMEM((C, 8, 128), jnp.float32),
                pltpu.VMEM((C, 8, 128), jnp.float32),
            ],
        ),
        compiler_params=pltpu.CompilerParams(
            dimension_semantics=("parallel", "parallel", "arbitrary"),
            vmem_limit_bytes=32 * 1024 * 1024),
    )(pred_r, tgt_r)

    inter = inter4.sum(axis=(1, 3))                        # (N, C)
    sums = sums4.sum(axis=(1, 3))                          # (N, C)
    dice = (2.0 * inter / (sums + 1e-6)).mean(axis=0)      # (C,)
    if weight is not None:
        w = jnp.asarray(weight, dtype=jnp.float32)
        return jnp.sum((1.0 - dice) * w / jnp.sum(w)) / num_classes
    return 1.0 - dice.mean()


class DiceLoss:
    """JAX/Pallas port of the PyTorch DiceLoss module (forward only)."""

    def __init__(self, num_classes, weight=None, ignore_index=-100):
        self.num_classes = num_classes
        self.weight = weight            # no learnable parameters in this module
        self.ignore_index = ignore_index

    def __call__(self, pred, target):
        return dice_loss_pallas(pred, target, self.num_classes,
                                weight=self.weight,
                                ignore_index=self.ignore_index)


def _dice_loss_ref(pred, target, num_classes, weight=None, ignore_index=-100):
    """Pure-JAX reference mirroring the PyTorch code (mask broadcast over classes)."""
    b, c, h, w = pred.shape
    predr = pred.reshape(b, c, -1).astype(jnp.float32)
    tgtr = target.reshape(b, -1)
    mask = tgtr != ignore_index
    predr = predr * mask[:, None, :].astype(predr.dtype)
    tgtm = jnp.where(mask, tgtr, 0).astype(jnp.int32)
    onehot = jnp.transpose(jnp.eye(num_classes, dtype=jnp.float32)[tgtm], (0, 2, 1))
    probs = jax.nn.softmax(predr, axis=1)
    inter = jnp.sum(probs * onehot, axis=2)
    sums = jnp.sum(probs + onehot, axis=2)
    dice = (2.0 * inter / (sums + 1e-6)).mean(axis=0)
    if weight is not None:
        ww = jnp.asarray(weight, dtype=jnp.float32)
        return jnp.sum((1.0 - dice) * ww / jnp.sum(ww)) / num_classes
    return 1.0 - dice.mean()


if __name__ == "__main__":
    key = jax.random.PRNGKey(0)
    k1, k2, k3, k4, k5, k6 = jax.random.split(key, 6)

    # --- Test 1: C == 2 (sigmoid-specialized path), f32 pred / i32 target,
    # ignore_index pixels, spatial padding path (256 px -> 32x128 rows).
    N, C, H, W = 2, 2, 16, 16
    pred = jax.random.normal(k1, (N, C, H, W), dtype=jnp.float32)
    target = jax.random.randint(k2, (N, H, W), 0, C, dtype=jnp.int32)
    ignore_mask = jax.random.bernoulli(k3, 0.1, (N, H, W))
    target = jnp.where(ignore_mask, jnp.int32(-100), target)

    loss_fn = DiceLoss(num_classes=C, weight=None, ignore_index=-100)
    loss = jax.block_until_ready(loss_fn(pred, target))
    ref = jax.block_until_ready(_dice_loss_ref(pred, target, C, None, -100))
    assert jnp.allclose(loss, ref, rtol=1e-5, atol=1e-5), (loss, ref)

    # --- Test 2: C == 3 (general per-class-plane softmax), bf16 pred streamed at
    # native width, int8 target, class weights, odd batch (2-way spatial split).
    N2, C2, H2, W2 = 3, 3, 96, 96
    pred2 = jax.random.normal(k4, (N2, C2, H2, W2), dtype=jnp.float32).astype(jnp.bfloat16)
    target2 = jax.random.randint(k5, (N2, H2, W2), 0, C2, dtype=jnp.int32)
    ignore2 = jax.random.bernoulli(k6, 0.15, (N2, H2, W2))
    target2 = jnp.where(ignore2, -100, target2).astype(jnp.int8)
    wvec = jnp.array([0.2, 0.3, 0.5], dtype=jnp.float32)

    loss_fn2 = DiceLoss(num_classes=C2, weight=wvec, ignore_index=-100)
    loss2 = jax.block_until_ready(loss_fn2(pred2, target2))
    ref2 = jax.block_until_ready(_dice_loss_ref(pred2, target2, C2, wvec, -100))
    assert jnp.allclose(loss2, ref2, rtol=1e-5, atol=1e-5), (loss2, ref2)

    print("KERNEL_OK")
</pallas_src>

<mosaic_0001>
module attributes {stable_mosaic.version = 11 : i64} {
  func.func @_dice_sums_kernel(%arg0: i32, %arg1: i32, %arg2: i32, %arg3: memref<1x2x32x128xf32, #tpu.memory_space<vmem>>, %arg4: memref<1x1x32x128xi32, #tpu.memory_space<vmem>>, %arg5: memref<1x1x2x128xf32, #tpu.memory_space<vmem>>, %arg6: memref<1x1x2x128xf32, #tpu.memory_space<vmem>>, %arg7: memref<2x8x128xf32, #tpu.memory_space<vmem>>, %arg8: memref<2x8x128xf32, #tpu.memory_space<vmem>>) attributes {dimension_semantics = [#tpu.dimension_semantics<parallel>, #tpu.dimension_semantics<parallel>, #tpu.dimension_semantics<arbitrary>], iteration_bounds = array<i64: 2, 1, 1>, scalar_prefetch = 0 : i64, scratch_operands = 2 : i64, tpu.core_type = #tpu.core_type<tc>, window_params = [{transform_indices = @transform_0, window_bounds = array<i64: 1, 2, 32, 128>}, {transform_indices = @transform_1, window_bounds = array<i64: 1, 1, 32, 128>}, {transform_indices = @transform_2, window_bounds = array<i64: 1, 1, 2, 128>}, {transform_indices = @transform_3, window_bounds = array<i64: 1, 1, 2, 128>}]} {
    %c0_i32 = arith.constant 0 : i32
    %0 = arith.cmpi eq, %arg2, %c0_i32 : i32
    %1 = arith.extui %0 : i1 to i32
    %c0_i32_0 = arith.constant 0 : i32
    %2 = arith.cmpi ne, %1, %c0_i32_0 : i32
    scf.if %2 {
      %cst_49 = arith.constant 0.000000e+00 : f32
      %101 = vector.broadcast %cst_49 : f32 to vector<2x8x128xf32>
      %c0_50 = arith.constant 0 : index
      %c0_51 = arith.constant 0 : index
      %c0_52 = arith.constant 0 : index
      %102 = vector.load %arg7[%c0_50, %c0_51, %c0_52] : memref<2x8x128xf32, #tpu.memory_space<vmem>>, vector<2x8x128xf32>
      tpu.vector_store %arg7[%c0_50, %c0_51, %c0_52], %101 {strides = array<i32>} : memref<2x8x128xf32, #tpu.memory_space<vmem>>, vector<2x8x128xf32>,
      %cst_53 = arith.constant 0.000000e+00 : f32
      %103 = vector.broadcast %cst_53 : f32 to vector<2x8x128xf32>
      %c0_54 = arith.constant 0 : index
      %c0_55 = arith.constant 0 : index
      %c0_56 = arith.constant 0 : index
      %104 = vector.load %arg8[%c0_54, %c0_55, %c0_56] : memref<2x8x128xf32, #tpu.memory_space<vmem>>, vector<2x8x128xf32>
      tpu.vector_store %arg8[%c0_54, %c0_55, %c0_56], %103 {strides = array<i32>} : memref<2x8x128xf32, #tpu.memory_space<vmem>>, vector<2x8x128xf32>,
    } else {
    }
    %c0 = arith.constant 0 : index
    %c0_1 = arith.constant 0 : index
    %c0_2 = arith.constant 0 : index
    %c0_3 = arith.constant 0 : index
    %3 = vector.load %arg4[%c0, %c0_1, %c0_2, %c0_3] : memref<1x1x32x128xi32, #tpu.memory_space<vmem>>, vector<1x1x32x128xi32>
    %4 = vector.shape_cast %3 : vector<1x1x32x128xi32> to vector<32x128xi32>
    %c-100_i32 = arith.constant -100 : i32
    %5 = vector.broadcast %c-100_i32 : i32 to vector<32x128xi32>
    %6 = arith.cmpi eq, %4, %5 : vector<32x128xi32>
    %7 = arith.extui %6 : vector<32x128xi1> to vector<32x128xi32>
    %8 = arith.sitofp %7 : vector<32x128xi32> to vector<32x128xf32>
    %cst = arith.constant 1.000000e+00 : f32
    %9 = vector.broadcast %cst : f32 to vector<32x128xf32>
    %10 = arith.subf %9, %8 : vector<32x128xf32>
    %c0_i32_4 = arith.constant 0 : i32
    %11 = vector.broadcast %c0_i32_4 : i32 to vector<32x128xi32>
    %12 = arith.select %6, %11, %4 : vector<32x128xi1>, vector<32x128xi32>
    %c1_i32 = arith.constant 1 : i32
    %13 = arith.muli %arg1, %c1_i32 : i32
    %14 = arith.addi %13, %arg2 : i32
    %c32_i32 = arith.constant 32 : i32
    %15 = arith.muli %14, %c32_i32 : i32
    %16 = tpu.iota {dimensions = array<i32: 0>} : vector<32x128xi32>
    %17 = tpu.iota {dimensions = array<i32: 1>} : vector<32x128xi32>
    %18 = vector.broadcast %15 : i32 to vector<32x128xi32>
    %19 = arith.addi %18, %16 : vector<32x128xi32>
    %c128_i32 = arith.constant 128 : i32
    %20 = vector.broadcast %c128_i32 : i32 to vector<32x128xi32>
    %21 = arith.muli %19, %20 : vector<32x128xi32>
    %22 = arith.addi %21, %17 : vector<32x128xi32>
    %c256_i32 = arith.constant 256 : i32
    %23 = vector.broadcast %c256_i32 : i32 to vector<32x128xi32>
    %24 = arith.cmpi slt, %22, %23 : vector<32x128xi32>
    %25 = arith.extui %24 : vector<32x128xi1> to vector<32x128xi32>
    %26 = arith.sitofp %25 : vector<32x128xi32> to vector<32x128xf32>
    %c0_5 = arith.constant 0 : index
    %c0_6 = arith.constant 0 : index
    %c0_7 = arith.constant 0 : index
    %c0_8 = arith.constant 0 : index
    %27 = vector.load %arg3[%c0_5, %c0_6, %c0_7, %c0_8] : memref<1x2x32x128xf32, #tpu.memory_space<vmem>>, vector<1x1x32x128xf32>
    %28 = vector.shape_cast %27 : vector<1x1x32x128xf32> to vector<32x128xf32>
    %c0_9 = arith.constant 0 : index
    %c1 = arith.constant 1 : index
    %c0_10 = arith.constant 0 : index
    %c0_11 = arith.constant 0 : index
    %29 = vector.load %arg3[%c0_9, %c1, %c0_10, %c0_11] : memref<1x2x32x128xf32, #tpu.memory_space<vmem>>, vector<1x1x32x128xf32>
    %30 = vector.shape_cast %29 : vector<1x1x32x128xf32> to vector<32x128xf32>
    %31 = arith.subf %30, %28 : vector<32x128xf32>
    %32 = arith.mulf %31, %10 : vector<32x128xf32>
    %33 = math.absf %32 : vector<32x128xf32>
    %cst_12 = arith.constant 0.000000e+00 : f32
    %34 = vector.broadcast %cst_12 : f32 to vector<32x128xf32>
    %35 = arith.subf %34, %33 : vector<32x128xf32>
    %36 = math.exp %35 : vector<32x128xf32>
    %cst_13 = arith.constant 1.000000e+00 : f32
    %37 = vector.broadcast %cst_13 : f32 to vector<32x128xf32>
    %38 = arith.addf %37, %36 : vector<32x128xf32>
    %39 = tpu.reciprocal %38 {approx = true} : vector<32x128xf32> -> vector<32x128xf32>
    %40 = arith.mulf %38, %39 : vector<32x128xf32>
    %cst_14 = arith.constant 2.000000e+00 : f32
    %41 = vector.broadcast %cst_14 : f32 to vector<32x128xf32>
    %42 = arith.subf %41, %40 : vector<32x128xf32>
    %43 = arith.mulf %39, %42 : vector<32x128xf32>
    %cst_15 = arith.constant 0.000000e+00 : f32
    %44 = vector.broadcast %cst_15 : f32 to vector<32x128xf32>
    %45 = arith.cmpf oge, %32, %44 : vector<32x128xf32>
    %46 = arith.mulf %36, %43 : vector<32x128xf32>
    %47 = arith.select %45, %43, %46 : vector<32x128xi1>, vector<32x128xf32>
    %cst_16 = arith.constant 1.000000e+00 : f32
    %48 = vector.broadcast %cst_16 : f32 to vector<32x128xf32>
    %49 = arith.subf %48, %47 : vector<32x128xf32>
    %c0_i32_17 = arith.constant 0 : i32
    %50 = vector.broadcast %c0_i32_17 : i32 to vector<32x128xi32>
    %51 = arith.cmpi eq, %12, %50 : vector<32x128xi32>
    %52 = arith.extui %51 : vector<32x128xi1> to vector<32x128xi32>
    %53 = arith.sitofp %52 : vector<32x128xi32> to vector<32x128xf32>
    %54 = arith.mulf %53, %26 : vector<32x128xf32>
    %55 = arith.mulf %49, %26 : vector<32x128xf32>
    %c0_18 = arith.constant 0 : index
    %c0_19 = arith.constant 0 : index
    %c0_20 = arith.constant 0 : index
    %56 = vector.load %arg7[%c0_18, %c0_19, %c0_20] : memref<2x8x128xf32, #tpu.memory_space<vmem>>, vector<1x8x128xf32>
    %57 = vector.shape_cast %56 : vector<1x8x128xf32> to vector<8x128xf32>
    %58 = arith.mulf %55, %54 : vector<32x128xf32>
    %59 = vector.shape_cast %58 : vector<32x128xf32> to vector<4x8x128xf32>
    %cst_21 = arith.constant dense<0.000000e+00> : vector<8x128xf32>
    %60 = vector.multi_reduction <add>, %59, %cst_21 [0] : vector<4x8x128xf32> to vector<8x128xf32>
    %61 = arith.addf %57, %60 : vector<8x128xf32>
    %c0_22 = arith.constant 0 : index
    %c0_23 = arith.constant 0 : index
    %c0_24 = arith.constant 0 : index
    %62 = vector.load %arg7[%c0_22, %c0_23, %c0_24] : memref<2x8x128xf32, #tpu.memory_space<vmem>>, vector<1x8x128xf32>
    %63 = vector.shape_cast %62 : vector<1x8x128xf32> to vector<8x128xf32>
    %64 = vector.shape_cast %61 : vector<8x128xf32> to vector<1x8x128xf32>
    tpu.vector_store %arg7[%c0_22, %c0_23, %c0_24], %64 {strides = array<i32>} : memref<2x8x128xf32, #tpu.memory_space<vmem>>, vector<1x8x128xf32>,
    %c0_25 = arith.constant 0 : index
    %c0_26 = arith.constant 0 : index
    %c0_27 = arith.constant 0 : index
    %65 = vector.load %arg8[%c0_25, %c0_26, %c0_27] : memref<2x8x128xf32, #tpu.memory_space<vmem>>, vector<1x8x128xf32>
    %66 = vector.shape_cast %65 : vector<1x8x128xf32> to vector<8x128xf32>
    %67 = arith.addf %55, %54 : vector<32x128xf32>
    %68 = vector.shape_cast %67 : vector<32x128xf32> to vector<4x8x128xf32>
    %cst_28 = arith.constant dense<0.000000e+00> : vector<8x128xf32>
    %69 = vector.multi_reduction <add>, %68, %cst_28 [0] : vector<4x8x128xf32> to vector<8x128xf32>
    %70 = arith.addf %66, %69 : vector<8x128xf32>
    %c0_29 = arith.constant 0 : index
    %c0_30 = arith.constant 0 : index
    %c0_31 = arith.constant 0 : index
    %71 = vector.load %arg8[%c0_29, %c0_30, %c0_31] : memref<2x8x128xf32, #tpu.memory_space<vmem>>, vector<1x8x128xf32>
    %72 = vector.shape_cast %71 : vector<1x8x128xf32> to vector<8x128xf32>
    %73 = vector.shape_cast %70 : vector<8x128xf32> to vector<1x8x128xf32>
    tpu.vector_store %arg8[%c0_29, %c0_30, %c0_31], %73 {strides = array<i32>} : memref<2x8x128xf32, #tpu.memory_space<vmem>>, vector<1x8x128xf32>,
    %c1_i32_32 = arith.constant 1 : i32
    %74 = vector.broadcast %c1_i32_32 : i32 to vector<32x128xi32>
    %75 = arith.cmpi eq, %12, %74 : vector<32x128xi32>
    %76 = arith.extui %75 : vector<32x128xi1> to vector<32x128xi32>
    %77 = arith.sitofp %76 : vector<32x128xi32> to vector<32x128xf32>
    %78 = arith.mulf %77, %26 : vector<32x128xf32>
    %79 = arith.mulf %47, %26 : vector<32x128xf32>
    %c1_33 = arith.constant 1 : index
    %c0_34 = arith.constant 0 : index
    %c0_35 = arith.constant 0 : index
    %80 = vector.load %arg7[%c1_33, %c0_34, %c0_35] : memref<2x8x128xf32, #tpu.memory_space<vmem>>, vector<1x8x128xf32>
    %81 = vector.shape_cast %80 : vector<1x8x128xf32> to vector<8x128xf32>
    %82 = arith.mulf %79, %78 : vector<32x128xf32>
    %83 = vector.shape_cast %82 : vector<32x128xf32> to vector<4x8x128xf32>
    %cst_36 = arith.constant dense<0.000000e+00> : vector<8x128xf32>
    %84 = vector.multi_reduction <add>, %83, %cst_36 [0] : vector<4x8x128xf32> to vector<8x128xf32>
    %85 = arith.addf %81, %84 : vector<8x128xf32>
    %c1_37 = arith.constant 1 : index
    %c0_38 = arith.constant 0 : index
    %c0_39 = arith.constant 0 : index
    %86 = vector.load %arg7[%c1_37, %c0_38, %c0_39] : memref<2x8x128xf32, #tpu.memory_space<vmem>>, vector<1x8x128xf32>
    %87 = vector.shape_cast %86 : vector<1x8x128xf32> to vector<8x128xf32>
    %88 = vector.shape_cast %85 : vector<8x128xf32> to vector<1x8x128xf32>
    tpu.vector_store %arg7[%c1_37, %c0_38, %c0_39], %88 {strides = array<i32>} : memref<2x8x128xf32, #tpu.memory_space<vmem>>, vector<1x8x128xf32>,
    %c1_40 = arith.constant 1 : index
    %c0_41 = arith.constant 0 : index
    %c0_42 = arith.constant 0 : index
    %89 = vector.load %arg8[%c1_40, %c0_41, %c0_42] : memref<2x8x128xf32, #tpu.memory_space<vmem>>, vector<1x8x128xf32>
    %90 = vector.shape_cast %89 : vector<1x8x128xf32> to vector<8x128xf32>
    %91 = arith.addf %79, %78 : vector<32x128xf32>
    %92 = vector.shape_cast %91 : vector<32x128xf32> to vector<4x8x128xf32>
    %cst_43 = arith.constant dense<0.000000e+00> : vector<8x128xf32>
    %93 = vector.multi_reduction <add>, %92, %cst_43 [0] : vector<4x8x128xf32> to vector<8x128xf32>
    %94 = arith.addf %90, %93 : vector<8x128xf32>
    %c1_44 = arith.constant 1 : index
    %c0_45 = arith.constant 0 : index
    %c0_46 = arith.constant 0 : index
    %95 = vector.load %arg8[%c1_44, %c0_45, %c0_46] : memref<2x8x128xf32, #tpu.memory_space<vmem>>, vector<1x8x128xf32>
    %96 = vector.shape_cast %95 : vector<1x8x128xf32> to vector<8x128xf32>
    %97 = vector.shape_cast %94 : vector<8x128xf32> to vector<1x8x128xf32>
    tpu.vector_store %arg8[%c1_44, %c0_45, %c0_46], %97 {strides = array<i32>} : memref<2x8x128xf32, #tpu.memory_space<vmem>>, vector<1x8x128xf32>,
    %c0_i32_47 = arith.constant 0 : i32
    %98 = arith.cmpi eq, %arg2, %c0_i32_47 : i32
    %99 = arith.extui %98 : i1 to i32
    %c0_i32_48 = arith.constant 0 : i32
    %100 = arith.cmpi ne, %99, %c0_i32_48 : i32
    scf.if %100 {
      %c0_49 = arith.constant 0 : index
      %c0_50 = arith.constant 0 : index
      %c0_51 = arith.constant 0 : index
      %101 = vector.load %arg7[%c0_49, %c0_50, %c0_51] : memref<2x8x128xf32, #tpu.memory_space<vmem>>, vector<2x8x128xf32>
      %cst_52 = arith.constant dense<0.000000e+00> : vector<2x128xf32>
      %102 = vector.multi_reduction <add>, %101, %cst_52 [1] : vector<2x8x128xf32> to vector<2x128xf32>
      %103 = vector.shape_cast %102 : vector<2x128xf32> to vector<1x1x2x128xf32>
      %c0_53 = arith.constant 0 : index
      %c0_54 = arith.constant 0 : index
      %c0_55 = arith.constant 0 : index
      %c0_56 = arith.constant 0 : index
      %104 = vector.load %arg5[%c0_53, %c0_54, %c0_55, %c0_56] : memref<1x1x2x128xf32, #tpu.memory_space<vmem>>, vector<1x1x2x128xf32>
      tpu.vector_store %arg5[%c0_53, %c0_54, %c0_55, %c0_56], %103 {strides = array<i32>} : memref<1x1x2x128xf32, #tpu.memory_space<vmem>>, vector<1x1x2x128xf32>,
      %c0_57 = arith.constant 0 : index
      %c0_58 = arith.constant 0 : index
      %c0_59 = arith.constant 0 : index
      %105 = vector.load %arg8[%c0_57, %c0_58, %c0_59] : memref<2x8x128xf32, #tpu.memory_space<vmem>>, vector<2x8x128xf32>
      %cst_60 = arith.constant dense<0.000000e+00> : vector<2x128xf32>
      %106 = vector.multi_reduction <add>, %105, %cst_60 [1] : vector<2x8x128xf32> to vector<2x128xf32>
      %107 = vector.shape_cast %106 : vector<2x128xf32> to vector<1x1x2x128xf32>
      %c0_61 = arith.constant 0 : index
      %c0_62 = arith.constant 0 : index
      %c0_63 = arith.constant 0 : index
      %c0_64 = arith.constant 0 : index
      %108 = vector.load %arg6[%c0_61, %c0_62, %c0_63, %c0_64] : memref<1x1x2x128xf32, #tpu.memory_space<vmem>>, vector<1x1x2x128xf32>
      tpu.vector_store %arg6[%c0_61, %c0_62, %c0_63, %c0_64], %107 {strides = array<i32>} : memref<1x1x2x128xf32, #tpu.memory_space<vmem>>, vector<1x1x2x128xf32>,
    } else {
    }
    return
  }
  func.func @transform_0(%arg0: i32, %arg1: i32, %arg2: i32) -> (i32, i32, i32, i32) {
    %c1_i32 = arith.constant 1 : i32
    %0 = arith.muli %arg1, %c1_i32 : i32
    %1 = arith.addi %0, %arg2 : i32
    %c0_i32 = arith.constant 0 : i32
    %c0_i32_0 = arith.constant 0 : i32
    %c0_i32_1 = arith.constant 0 : i32
    return %arg0, %c0_i32, %1, %c0_i32_0 : i32, i32, i32, i32
  }
  func.func @transform_1(%arg0: i32, %arg1: i32, %arg2: i32) -> (i32, i32, i32, i32) {
    %c1_i32 = arith.constant 1 : i32
    %0 = arith.muli %arg1, %c1_i32 : i32
    %1 = arith.addi %0, %arg2 : i32
    %c0_i32 = arith.constant 0 : i32
    %c0_i32_0 = arith.constant 0 : i32
    %c0_i32_1 = arith.constant 0 : i32
    return %arg0, %c0_i32, %1, %c0_i32_0 : i32, i32, i32, i32
  }
  func.func @transform_2(%arg0: i32, %arg1: i32, %arg2: i32) -> (i32, i32, i32, i32) {
    %c0_i32 = arith.constant 0 : i32
    %c0_i32_0 = arith.constant 0 : i32
    %c0_i32_1 = arith.constant 0 : i32
    return %arg0, %arg1, %c0_i32, %c0_i32_0 : i32, i32, i32, i32
  }
  func.func @transform_3(%arg0: i32, %arg1: i32, %arg2: i32) -> (i32, i32, i32, i32) {
    %c0_i32 = arith.constant 0 : i32
    %c0_i32_0 = arith.constant 0 : i32
    %c0_i32_1 = arith.constant 0 : i32
    return %arg0, %arg1, %c0_i32, %c0_i32_0 : i32, i32, i32, i32
  }
}

</mosaic_0001>

<bundles_post_ra>
// kernel: tpu_custom_call.1
= control target key start
LH: loop header
LB: loop body
LE: loop exit
PB: predicated region body
PF: predicated region fallthrough
CT: control target
= control target key end

     0   :  { %s1343_s0 = inlined_call_operand.hbm [shape: f32[2,2,32,128], index: 0, kind: input, shape index: {}]   ;;  %s1344_s1 = inlined_call_operand.hbm [shape: s32[2,1,32,128], index: 1, kind: input, shape index: {}]   ;;  %s1345_s2 = inlined_call_operand.hbm [shape: f32[2,1,2,128], index: 2, kind: output, shape index: {0}]   ;;  %s1346_s3 = inlined_call_operand.hbm [shape: f32[2,1,2,128], index: 3, kind: output, shape index: {1}]  }
   0x1   :  { %1347 = sst [smem:[#allocation16_spill]] %s1343_s0 }
   0x2   :  { %9 = vsyncpa [#allocation5], 0 }
   0x3   :  { %11 = vsyncpa [#allocation5 + $0x1], 0 }
   0x4   :  { %12 = vsyncpa [#allocation8], 0 }
   0x5   :  { %14 = vsyncpa [#allocation8 + $0x1], 0 }
   0x6   :  { %15 = vsyncpa [#allocation6], 0 }
   0x7   :  { %17 = vsyncpa [#allocation6 + $0x1], 0 }
   0x8   :  { %18 = vsyncpa [#allocation11], 0 }
   0x9   :  { %20 = vsyncpa [#allocation11 + $0x1], 0  ;;  %s1065_s12 = smov 0   ;;  %s1067_s13 = smov 0  }
   0xa   :  { %s1069_s14 = smov 0   ;;  %s1071_s15 = smov 0  }
   0xb   :  { %s1073_s16 = smov 0   ;;  %s1075_s17 = smov 0  }
   0xc LB: > { %s728_s18 = sadd.s32 4294967295, %s1040_s17   ;;  %s729_s19 = sadd.s32 4294967294, %s1040_s17   ;;  %s1040_s17 = sphi %s1075_s17, %s26_s17   ;;  %s1036_s16 = sphi %s1073_s16, %s1358_s16   ;;  %s1032_s15 = sphi %s1071_s15, %s1357_s15   ;;  %s1028_s14 = sphi %s1069_s14, %s1356_s14   ;;  %s1024_s13 = sphi %s1067_s13, %s1355_s13   ;;  %s1020_s12 = sphi %s1065_s12, %s1354_s12  }
   0xd   : > { %s45_s20 = sadd.s32 1, %s1036_s16  ;;  %s56_s21 = sadd.s32 1, %s1028_s14 }
   0xe   : > { %p47_p0 = scmp.ge.s32.totalorder %s45_s20, 2  ;;  %p63_p1 = scmp.ne.s32.totalorder %s1028_s14, %s1024_s13 }
   0xf   : > { %p64_p2 = scmp.eq.s32.totalorder %s1040_s17, 0  ;;  %p69_p3 = scmp.ne.s32.totalorder %s1024_s13, %s1020_s12 }
  0x10   : > { %s1360_s20 = smov (%p47_p0, %s45_s20), 0  ;;  %p70_p5 = scmp.eq.s32.totalorder %s728_s18, 0 }
  0x11   : > { %p1106_p4 = por %p64_p2, %p63_p1  ;;  %s51_s23 = ssub.s32 %s1036_s16, %s1360_s20 }
  0x12   : > { %p125_p6 = scmp.eq.s32.totalorder %s728_s18, 1  ;;  %p54_p7 = scmp.eq.s32.totalorder %s51_s23, 0 }
  0x13   : > { %p1112_p8 = por %p70_p5, %p69_p3  ;;  %p131_p10 = scmp.eq.s32.totalorder %s729_s19, 1 }
  0x14   : > { %p1116_p9 = por %p125_p6, %p63_p1  ;;  %p731_p12 = scmp.ge.s32.totalorder %s1040_s17, 2 }
  0x15   : > { %s1121_s26 = scalar_select %p54_p7, %s1028_s14, %s56_s21  }
  0x16   : > { %p1123_p11 = por %p131_p10, %p69_p3  ;;  %p793_p13 = scmp.lt.s32.totalorder %s1040_s17, 2 }
  0x17   : > { %s1130_s28 = sand.u32 1, %s1028_s14   ;;  %s769_s30 = sshll.u32 %s1036_s16, 6 }
  0x18   : > { %s732_s29 = sshll.u32 %s1130_s28, 6  ;;  %s1352_s0 = sld [smem:[#allocation16_spill]] }
  0x19   : > { %s183_s7 = scalar_lea.vmem [#allocation4], %s732_s29  ;;  %p1139_p0 = pnand %p793_p13, %p1106_p4 }
  0x1a   : > { %s194_s8 = sshll.u32 %s183_s7, 4  ;;  %p738_p1 = scmp.ge.s32.totalorder %s1040_s17, 1  ;;  %s195_s8 = int_to_ptr.vmem [resolvable:$true] %s194_s8 }
  0x1b   : > { %s180_s11 = scalar_lea.sflag [#allocation5], %s1130_s28  ;;  %s1042_s18 = smov 128  }
  0x1c   : > { %s1043_s19 = smov 8   ;;  %p227_p2 = scmp.lt.s32.totalorder %s1040_s17, 3 }
  0x1d   : > { %s735_s21 = sshll.u32 %s1130_s28, 5  ;;  %s770_s23 = sshll.u32 %s1036_s16, 5 }
  0x1e   : > { %s191_s6 = scalar_lea.hbm %s1352_s0, %s769_s30  ;;  %p228_p3 = pnand %p738_p1, %p227_p2 }
  0x1f   : > { %s192_s9 = sshll.u32 %s191_s6, 4  ;;  %s216_s22 = scalar_lea.hbm %s1344_s1, %s770_s23  ;;  %s193_s9 = int_to_ptr.hbm [resolvable:$true] %s192_s9 }
  0x20   : > { %782 = dma.hbm_to_vmem [thread:$0]  (!%p1139_p0), %s193_s9, 1024, %s195_s8, %s180_s11, %s1042_s18, %s1042_s18, %s1043_s19  }
  0x21   : > { %s208_s4 = scalar_lea.vmem [#allocation7], %s735_s21  ;;  %s217_s6 = sshll.u32 %s216_s22, 4  ;;  %s218_s6 = int_to_ptr.hbm [resolvable:$true] %s217_s6 }
  0x22   : > { %s219_s5 = sshll.u32 %s208_s4, 4  ;;  %s205_s7 = scalar_lea.sflag [#allocation8], %s1130_s28  ;;  %s220_s5 = int_to_ptr.vmem [resolvable:$true] %s219_s5 }
  0x23   : > { %785 = dma.hbm_to_vmem [thread:$0]  (!%p1139_p0), %s218_s6, 512, %s220_s5, %s205_s7, %s1042_s18, %s1042_s18, %s1043_s19  }
  0x24   : > { %231 = sbr.rel (%p228_p3) target bundleno = 125 (0x7d), region = 28  ;;  %s1157_s8 = sand.u32 (!%p228_p3), 1, %s1024_s13  }
  0x25   : > { %s739_s9 = sshll.u32 (!%p228_p3), %s1157_s8, 6  ;;  %s234_s11 = scalar_lea.sflag (!%p228_p3), [#allocation5], %s1157_s8 }
  0x26   : > { %s1161_s0 = scalar_lea.vmem (!%p228_p3), [#allocation4], %s739_s9 }
  0x29   : > { %1003 = dma.done.wait (%p1112_p8), %s234_s11, 1024  }
  0x2a   : > { %1005 = vsyncadd (%p1112_p8), %s234_s11, 4294966272  ;;  %s740_s28 = sshll.u32 %s1157_s8, 5  ;;  %s244_s10 = scalar_lea.sflag [#allocation8], %s1157_s8 }
  0x2b   : > { %s247_s18 = scalar_lea.vmem [#allocation7], %s740_s28 }
  0x2c   : > { %1007 = dma.done.wait (%p1112_p8), %s244_s10, 512  }
  0x2d   : > { %1009 = vsyncadd (%p1112_p8), %s244_s10, 4294966784  ;;  %v1173_v0 = vld [vmem:[%s247_s18] sm:$0xff]  ;;  %v1175_v1 = vld [vmem:[%s247_s18 + $0x8] sm:$0xff]  ;;  %v1044_v4 = vmov 0.0   ;;  %v319_v23 = vlaneseq  ;;  %s765_s24 = sshll.u32 %s1032_s15, 1  ;;  %s545_s11 = scalar_lea.sflag [#allocation6], %s1157_s8 }
  0x2e   : > { %v1177_v2 = vld [vmem:[%s247_s18 + $0x10] sm:$0xff]  ;;  %v1179_v3 = vld [vmem:[%s247_s18 + $0x18] sm:$0xff]  ;;  %vm297_vm0 = vcmp.eq.s32.totalorder %v1173_v0, 4294967196  ;;  %vm298_vm1 = vcmp.eq.s32.totalorder %v1175_v1, 4294967196  ;;  %v351_v8 = vld [vmem:[%s1161_s0] sm:$0xff]  ;;  %s561_s23 = scalar_lea.hbm %s1345_s2, %s765_s24  ;;  %s576_s22 = scalar_lea.hbm %s1346_s3, %s765_s24 }
  0x2f   : > { %vm299_vm2 = vcmp.eq.s32.totalorder %v1177_v2, 4294967196  ;;  %vm300_vm3 = vcmp.eq.s32.totalorder %v1179_v3, 4294967196  ;;  %v743_v5 = vsel %vm297_vm0, 1.0, %v1044_v4  ;;  %v744_v6 = vsel %vm298_vm1, 1.0, %v1044_v4  ;;  %v352_v10 = vld [vmem:[%s1161_s0 + $0x8] sm:$0xff]  ;;  %v751_v11 = vld [vmem:[%s1161_s0 + $0x20] sm:$0xff] }
  0x30   : > { %v745_v7 = vsel %vm299_vm2, 1.0, %v1044_v4  ;;  %v746_v9 = vsel %vm300_vm3, 1.0, %v1044_v4  ;;  %v752_v12 = vld [vmem:[%s1161_s0 + $0x28] sm:$0xff]  ;;  %v309_v13 = vsub.f32 1.0, %v743_v5  ;;  %v353_v14 = vld [vmem:[%s1161_s0 + $0x10] sm:$0xff]  ;;  %v310_v16 = vsub.f32 1.0, %v744_v6 }
  0x31   : > { %v753_v15 = vld [vmem:[%s1161_s0 + $0x30] sm:$0xff]  ;;  %v311_v17 = vsub.f32 1.0, %v745_v7  ;;  %v354_v18 = vld [vmem:[%s1161_s0 + $0x18] sm:$0xff]  ;;  %v312_v20 = vsub.f32 1.0, %v746_v9  ;;  %v360_v21 = vsub.f32 %v751_v11, %v351_v8  ;;  %v361_v22 = vsub.f32 %v752_v12, %v352_v10  ;;  %s565_s5 = sshll.u32 %s561_s23, 4  ;;  %s580_s9 = sshll.u32 %s576_s22, 4  ;;  %s566_s5 = int_to_ptr.hbm [resolvable:$true] %s565_s5  ;;  %s1292_s9 = int_to_ptr.hbm [resolvable:$true] %s580_s9 }
  0x32   : > { %v754_v19 = vld [vmem:[%s1161_s0 + $0x38] sm:$0xff]  ;;  %v362_v24 = vsub.f32 %v753_v15, %v353_v14  ;;  %v320_v31 = vshrl.u32 %v319_v23, 7  ;;  %v325_v46 = vand.u32 127, %v319_v23  ;;  %v313_v61 = vsel %vm297_vm0, 0, %v1173_v0  ;;  %s741_s0 = sshll.u32 %s1157_s8, 1  ;;  %s936_s28 = sshra.s32 %s566_s5, 4  ;;  %s937_s28 = int_to_ptr.hbm [resolvable:$true] %s936_s28 }
  0x33   : > { %v363_v25 = vsub.f32 %v754_v19, %v354_v18  ;;  %v1205_v26 = vmul.f32 %v360_v21, %v309_v13  ;;  %v1207_v27 = vmul.f32 %v361_v22, %v310_v16  ;;  %v314_v62 = vsel %vm298_vm1, 0, %v1175_v1  ;;  %s273_s15 = scalar_lea.vmem [#allocation9], %s741_s0  ;;  %s280_s6 = scalar_lea.vmem [#allocation10], %s741_s0 }
  0x34   : > { %v1209_v28 = vmul.f32 %v362_v24, %v311_v17  ;;  %v321_v40 = vadd.s32 8, %v320_v31  ;;  %v322_v41 = vadd.s32 16, %v320_v31  ;;  %v323_v44 = vadd.s32 24, %v320_v31  ;;  %s563_s4 = sshll.u32 %s273_s15, 4  ;;  %s578_s7 = sshll.u32 %s280_s6, 4  ;;  %s564_s4 = int_to_ptr.vmem [resolvable:$true] %s563_s4  ;;  %s1290_s7 = int_to_ptr.vmem [resolvable:$true] %s578_s7 }
  0x35   : > { %v1211_v29 = vmul.f32 %v363_v25, %v312_v20  ;;  %v368_v30 = vand.u32 2147483647, %v1205_v26  ;;  %v369_v32 = vand.u32 2147483647, %v1207_v27  ;;  %v331_v47 = vmul.u32 128, %v320_v31  ;;  %s938_s10 = scalar_lea.hbm %s937_s28, 2  ;;  %p943_p7 = scmp.lt.s32.totalorder %s937_s28, %s1345_s2 }
  0x36   : > { %v370_v33 = vand.u32 2147483647, %v1209_v28  ;;  %v332_v48 = vmul.u32 128, %v321_v40  ;;  %v333_v49 = vmul.u32 128, %v322_v41  ;;  %v334_v50 = vmul.u32 128, %v323_v44  ;;  %p939_p4 = scmp.ne.s32.totalorder %s937_s28, %s938_s10  ;;  %s942_s24 = scalar_lea.hbm %s1345_s2, 4 }
  0x37   : > { %v371_v34 = vand.u32 2147483647, %v1211_v29  ;;  %v372_v35 = vsub.f32 0.0, %v368_v30  ;;  %v373_v36 = vsub.f32 0.0, %v369_v32  ;;  %v335_v52 = vadd.s32 %v331_v47, %v325_v46  ;;  %p944_p8 = scmp.lt.s32.totalorder %s942_s24, %s938_s10 }
  0x38   : > { %v374_v37 = vsub.f32 0.0, %v370_v33  ;;  %v336_v54 = vadd.s32 %v332_v48, %v325_v46  ;;  %v337_v55 = vadd.s32 %v333_v49, %v325_v46  ;;  %v338_v58 = vadd.s32 %v334_v50, %v325_v46  ;;  %p940_p5 = pnand %p939_p4, %p1116_p9 }
  0x39   : > { %v375_v38 = vsub.f32 0.0, %v371_v34  ;;  %v376_v39 = vmul.f32 1.442695, %v372_v35  ;;  %v378_v42 = vmul.f32 1.442695, %v373_v36  ;;  %v315_v5 = vsel %vm299_vm2, 0, %v1177_v2  ;;  %p945_p10 = por %p944_p8, %p943_p7 }
  0x3a   : > { %v380_v43 = vmul.f32 1.442695, %v374_v37  ;;  %vm339_vm4 = vcmp.lt.s32.totalorder %v335_v52, 256  ;;  %v316_v7 = vsel %vm300_vm3, 0, %v1179_v3  ;;  %vm340_vm5 = vcmp.lt.s32.totalorder %v336_v54, 256  ;;  %p941_p6 = pneg %p940_p5 }
  0x3b   : > { %846 = vpow2.f32 %v376_v39  ;;  %v382_v45 = vmul.f32 1.442695, %v375_v38  ;;  %vm341_vm6 = vcmp.lt.s32.totalorder %v337_v55, 256  ;;  %vm342_vm7 = vcmp.lt.s32.totalorder %v338_v58, 256 }
  0x3c   : > { %848 = vpow2.f32 %v378_v42  ;;  %v747_v0 = vsel %vm339_vm4, 1.0, %v1044_v4  ;;  %vm420_vm8 = vcmp.eq.s32.totalorder %v313_v61, 0  ;;  %vm421_vm9 = vcmp.eq.s32.totalorder %v314_v62, 0  ;;  %p946_p13 = pnand %p945_p10, %p941_p6 }
  0x3d   : > { %850 = vpow2.f32 %v380_v43  ;;  %v748_v1 = vsel %vm340_vm5, 1.0, %v1044_v4  ;;  %v1244_v2 = vsel %vm341_vm6, 1.0, %v1044_v4  ;;  %vm422_vm10 = vcmp.eq.s32.totalorder %v315_v5, 0 }
  0x3e   : > { %852 = vpow2.f32 %v382_v45  ;;  %vm423_vm11 = vcmp.eq.s32.totalorder %v316_v7, 0  ;;  %v1247_v9 = vsel %vm342_vm7, 1.0, %v1044_v4  ;;  %vm404_vm12 = vcmp.ge.f32.partialorder %v1205_v26, 0.0 }
  0x3f   : > { %vm405_vm13 = vcmp.ge.f32.partialorder %v1207_v27, 0.0  ;;  %vm406_vm14 = vcmp.ge.f32.partialorder %v1209_v28, 0.0  ;;  %vm407_vm15 = vcmp.ge.f32.partialorder %v1211_v29, 0.0  ;;  %v755_v11 = vsel %vm420_vm8, 1.0, %v1044_v4 }
  0x40   : > { %v756_v12 = vsel %vm421_vm9, 1.0, %v1044_v4  ;;  %v757_v15 = vsel %vm422_vm10, 1.0, %v1044_v4  ;;  %v758_v16 = vsel %vm423_vm11, 1.0, %v1044_v4  ;;  %vm460_vm0 = vcmp.eq.s32.totalorder %v313_v61, 1 }
  0x41   : > { %v1217_v51 = vpop.eup %846  ;;  %vm461_vm1 = vcmp.eq.s32.totalorder %v314_v62, 1  ;;  %vm462_vm2 = vcmp.eq.s32.totalorder %v315_v5, 1  ;;  %v432_v22 = vmul.f32 %v755_v11, %v747_v0  ;;  %v433_v23 = vmul.f32 %v756_v12, %v748_v1 }
  0x42   : > { %v1219_v53 = vpop.eup %848  ;;  %v384_v56 = vadd.f32 1.0, %v1217_v51  ;;  %vm463_vm3 = vcmp.eq.s32.totalorder %v316_v7, 1  ;;  %v759_v30 = vsel %vm460_vm0, 1.0, %v1044_v4  ;;  %v760_v33 = vsel %vm461_vm1, 1.0, %v1044_v4 }
  0x43   : > { %v1222_v57 = vpop.eup %850  ;;  %v385_v59 = vadd.f32 1.0, %v1219_v53  ;;  %v761_v34 = vsel %vm462_vm2, 1.0, %v1044_v4  ;;  %v434_v37 = vmul.f32 %v757_v15, %v1244_v2  ;;  %v435_v38 = vmul.f32 %v758_v16, %v1247_v9 }
  0x44   : > { %v1225_v60 = vpop.eup %852  ;;  %v386_v63 = vadd.f32 1.0, %v1222_v57  ;;  %854 = vrcp.f32 %v384_v56  ;;  %v762_v41 = vsel %vm463_vm3, 1.0, %v1044_v4  ;;  %v472_v42 = vmul.f32 %v759_v30, %v747_v0 }
  0x45   : > { %v387_v6 = vadd.f32 1.0, %v1225_v60  ;;  %856 = vrcp.f32 %v385_v59  ;;  %v473_v45 = vmul.f32 %v760_v33, %v748_v1  ;;  %v474_v46 = vmul.f32 %v761_v34, %v1244_v2 }
  0x46   : > { %858 = vrcp.f32 %v386_v63  ;;  %v475_v52 = vmul.f32 %v762_v41, %v1247_v9  ;;  %vm521_vm4 = vcmask 1041409  }
  0x47   : > { %860 = vrcp.f32 %v387_v6 }
  0x4a   : > { %v855_v8 = vpop.eup %854 }
  0x4b   : > { %v857_v3 = vpop.eup %856  ;;  %v392_v10 = vmul.f32 %v855_v8, %v384_v56 }
  0x4c   : > { %v859_v13 = vpop.eup %858  ;;  %v393_v14 = vmul.f32 %v857_v3, %v385_v59 }
  0x4d   : > { %v861_v17 = vpop.eup %860  ;;  %v394_v18 = vmul.f32 %v859_v13, %v386_v63  ;;  %v396_v19 = vsub.f32 2.0, %v392_v10 }
  0x4e   : > { %v395_v20 = vmul.f32 %v861_v17, %v387_v6  ;;  %v397_v21 = vsub.f32 2.0, %v393_v14 }
  0x4f   : > { %v398_v24 = vsub.f32 2.0, %v394_v18  ;;  %v400_v25 = vmul.f32 %v855_v8, %v396_v19 }
  0x50   : > { %v399_v31 = vsub.f32 2.0, %v395_v20  ;;  %v401_v32 = vmul.f32 %v857_v3, %v397_v21 }
  0x51   : > { %v402_v35 = vmul.f32 %v859_v13, %v398_v24  ;;  %v408_v36 = vmul.f32 %v1217_v51, %v400_v25 }
  0x52   : > { %v403_v39 = vmul.f32 %v861_v17, %v399_v31  ;;  %v409_v40 = vmul.f32 %v1219_v53, %v401_v32 }
  0x53   : > { %v410_v43 = vmul.f32 %v1222_v57, %v402_v35  ;;  %v412_v44 = vsel %vm404_vm12, %v400_v25, %v408_v36 }
  0x54   : > { %v411_v47 = vmul.f32 %v1225_v60, %v403_v39  ;;  %v413_v48 = vsel %vm405_vm13, %v401_v32, %v409_v40  ;;  %v416_v49 = vsub.f32 1.0, %v412_v44  ;;  %v476_v50 = vmul.f32 %v747_v0, %v412_v44 }
  0x55   : > { %v414_v51 = vsel %vm406_vm14, %v402_v35, %v410_v43  ;;  %v417_v4 = vsub.f32 1.0, %v413_v48  ;;  %v477_v53 = vmul.f32 %v748_v1, %v413_v48 }
  0x56   : > { %v415_v26 = vsel %vm407_vm15, %v403_v39, %v411_v47  ;;  %v418_v54 = vsub.f32 1.0, %v414_v51  ;;  %v436_v55 = vmul.f32 %v747_v0, %v416_v49  ;;  %v478_v56 = vmul.f32 %v1244_v2, %v414_v51 }
  0x57   : > { %v419_v57 = vsub.f32 1.0, %v415_v26  ;;  %v437_v58 = vmul.f32 %v748_v1, %v417_v4  ;;  %v479_v27 = vmul.f32 %v1247_v9, %v415_v26  ;;  %v482_v59 = vmul.f32 %v476_v50, %v472_v42 }
  0x58   : > { %v438_v60 = vmul.f32 %v1244_v2, %v418_v54  ;;  %v441_v28 = vmul.f32 %v436_v55, %v432_v22  ;;  %v483_v61 = vmul.f32 %v477_v53, %v473_v45  ;;  %v484_v62 = vmul.f32 %v478_v56, %v474_v46 }
  0x59   : > { %v439_v63 = vmul.f32 %v1247_v9, %v419_v57  ;;  %v442_v5 = vmul.f32 %v437_v58, %v433_v23  ;;  %v485_v6 = vmul.f32 %v479_v27, %v475_v52  ;;  %v451_v29 = vadd.f32 %v436_v55, %v432_v22 }
  0x5a   : > { %v443_v7 = vmul.f32 %v438_v60, %v434_v37  ;;  %v486_v8 = vadd.f32 %v483_v61, %v482_v59  ;;  %v452_v0 = vadd.f32 %v437_v58, %v433_v23  ;;  %v453_v3 = vadd.f32 %v438_v60, %v434_v37 }
  0x5b   : > { %v444_v10 = vmul.f32 %v439_v63, %v435_v38  ;;  %v445_v11 = vadd.f32 %v442_v5, %v441_v28  ;;  %v454_v1 = vadd.f32 %v439_v63, %v435_v38  ;;  %v493_v12 = vadd.f32 %v476_v50, %v472_v42 }
  0x5c   : > { %v487_v13 = vadd.f32 %v486_v8, %v484_v62  ;;  %v455_v14 = vadd.f32 %v452_v0, %v451_v29  ;;  %v494_v2 = vadd.f32 %v477_v53, %v473_v45  ;;  %v495_v15 = vadd.f32 %v478_v56, %v474_v46 }
  0x5d   : > { %v446_v16 = vadd.f32 %v445_v11, %v443_v7  ;;  %v496_v18 = vadd.f32 %v479_v27, %v475_v52 }
  0x5e   : > { %v488_v17 = vadd.f32 %v487_v13, %v485_v6  ;;  %v456_v9 = vadd.f32 %v455_v14, %v453_v3  ;;  %v497_v19 = vadd.f32 %v494_v2, %v493_v12 }
  0x5f   : > { %v447_v20 = vadd.f32 %v446_v16, %v444_v10 }
  0x60   : > { %v513_v21 = vrot.slane %v488_v17, 4  ;;  %v457_v22 = vadd.f32 %v456_v9, %v454_v1  ;;  %v498_v23 = vadd.f32 %v497_v19, %v495_v15 }
  0x61   : > { %v507_v24 = vrot.slane %v447_v20, 4 }
  0x62   : > { %v514_v25 = vadd.f32 %v513_v21, %v488_v17  ;;  %v499_v30 = vadd.f32 %v498_v23, %v496_v18  ;;  %v527_v31 = vrot.slane %v457_v22, 4 }
  0x63   : > { %v508_v32 = vadd.f32 %v507_v24, %v447_v20 }
  0x64   : > { %v515_v33 = vrot.slane %v514_v25, 2  ;;  %v528_v34 = vadd.f32 %v527_v31, %v457_v22  ;;  %v533_v35 = vrot.slane %v499_v30, 4 }
  0x65   : > { %v509_v36 = vrot.slane %v508_v32, 2 }
  0x66   : > { %v516_v37 = vadd.f32 %v515_v33, %v514_v25  ;;  %v529_v38 = vrot.slane %v528_v34, 2  ;;  %v534_v39 = vadd.f32 %v533_v35, %v499_v30 }
  0x67   : > { %v510_v40 = vadd.f32 %v509_v36, %v508_v32 }
  0x68   : > { %v517_v41 = vrot.slane %v516_v37, 1  ;;  %v530_v42 = vadd.f32 %v529_v38, %v528_v34  ;;  %v535_v43 = vrot.slane %v534_v39, 2 }
  0x69   : > { %v511_v44 = vrot.slane %v510_v40, 1 }
  0x6a   : > { %v518_v45 = vadd.f32 %v517_v41, %v516_v37  ;;  %v531_v46 = vrot.slane %v530_v42, 1  ;;  %v536_v47 = vadd.f32 %v535_v43, %v534_v39 }
  0x6b   : > { %v512_v48 = vadd.f32 %v511_v44, %v510_v40 }
  0x6c   : > { %v532_v49 = vadd.f32 %v531_v46, %v530_v42  ;;  %v537_v50 = vrot.slane %v536_v47, 1 }
  0x6d   : > { %v522_v51 = vsel %vm521_vm4, %v518_v45, %v512_v48 }
  0x6e   : > { %524 = vst [vmem:[%s273_s15] sm:$0x3] %v522_v51  ;;  %v538_v4 = vadd.f32 %v537_v50, %v536_v47 }
  0x6f   : > { %949 = shalt.err (!%p946_p13)
}
  0x70   : > { %775 = dma.vmem_to_hbm [thread:$0]  (%p1116_p9), %s564_s4, 32, %s566_s5, %s545_s11   ;;  %v541_v52 = vsel %vm521_vm4, %v538_v4, %v532_v49 }
  0x71   : > { %543 = vst [vmem:[%s280_s6] sm:$0x3] %v541_v52  ;;  %s550_s23 = scalar_lea.sflag [#allocation11], %s1157_s8  ;;  %s964_s29 = sshra.s32 %s1292_s9, 4  ;;  %s965_s29 = int_to_ptr.hbm [resolvable:$true] %s964_s29 }
  0x72   : > { %s966_s30 = scalar_lea.hbm %s965_s29, 2  ;;  %s970_s28 = scalar_lea.hbm %s1346_s3, 4 }
  0x73   : > { %p967_p0 = scmp.ne.s32.totalorder %s965_s29, %s966_s30  ;;  %p971_p3 = scmp.lt.s32.totalorder %s965_s29, %s1346_s3 }
  0x74   : > { %p972_p4 = scmp.lt.s32.totalorder %s970_s28, %s966_s30 }
  0x75   : > { %p968_p1 = pnand %p967_p0, %p1116_p9 }
  0x76   : > { %p973_p5 = por %p972_p4, %p971_p3 }
  0x77   : > { %p969_p2 = pneg %p968_p1 }
  0x79   : > { %p974_p6 = pnand %p973_p5, %p969_p2 }
  0x7b   : > { %977 = shalt.err (!%p974_p6)
}
  0x7c   : > { %776 = dma.vmem_to_hbm [thread:$0]  (%p1116_p9), %s1290_s7, 32, %s1292_s9, %s550_s23  }
  0x7d PF: > { %s592_s8 = sand.u32 1, %s1020_s12   ;;  %p787_p7 = pnand %p731_p12, %p1123_p11 }
  0x7e   : > { %s593_s4 = scalar_lea.sflag [#allocation6], %s592_s8 }
  0x7f   : > { %p788_p8 = pneg %p787_p7 }
  0x81   : > { %1011 = dma.done.wait (%p788_p8), %s593_s4, 32  }
  0x82   : > { %1013 = vsyncadd (%p788_p8), %s593_s4, 4294967264  ;;  %s603_s5 = scalar_lea.sflag [#allocation11], %s592_s8 }
  0x83   : > { %1015 = dma.done.wait (%p788_p8), %s603_s5, 32  }
  0x84   : > { %1017 = vsyncadd (%p788_p8), %s603_s5, 4294967264  ;;  %s26_s17 = sadd.s32 1, %s1040_s17   ;;  %s1354_s12 = smov %s1024_s13 }
  0x85   : > { %p23_p10 = scmp.ge.s32.totalorder %s26_s17, 4   ;;  %s1355_s13 = smov %s1028_s14 }
  0x86   : > { %s1356_s14 = smov %s1121_s26  ;;  %s1357_s15 = smov %s1036_s16 }
  0x87   : > { %s1358_s16 = smov %s1360_s20  ;;  %25 = sbr.rel (!%p23_p10) target bundleno = 12 (0xc), region = 114 }
  0x8c   :  { %609 = vsyncpa [#allocation5], 1 }
  0x8d   :  { %611 = vsyncpa [#allocation5 + $0x1], 1 }
  0x8e   :  { %612 = vsyncpa [#allocation8], 1 }
  0x8f   :  { %614 = vsyncpa [#allocation8 + $0x1], 1 }
  0x90   :  { %615 = vsyncpa [#allocation6], 1 }
  0x91   :  { %617 = vsyncpa [#allocation6 + $0x1], 1 }
  0x92   :  { %618 = vsyncpa [#allocation11], 1 }
  0x93   :  { %620 = vsyncpa [#allocation11 + $0x1], 1 }

</bundles_post_ra>
